<compile_context>
chip_gen: v5e
topology: v5e:2x2
jax: 0.10.0
libtpu: 0.0.40
codegen_flags: <defaults>
</compile_context>

<pallas_src>
import jax
import jax.numpy as jnp
from jax.experimental import pallas as pl
from jax.experimental.pallas import tpu as pltpu


def _lstm_step_kernel(x_ref, h_ref, c_ref, wx_ref, wh_ref, b_ref,
                      wfc_ref, bfc_ref, out_ref, hn_ref, cn_ref):
    # Gate pre-activations for a tile of row pairs: (tile, 8H), lane layout
    # [i_e|i_o|f_e|f_o|g_e|g_o|o_e|o_o]; every slice below is a clean 128-lane
    # multiple, and elementwise math matches the paired c/h layout.
    # Matmul operands in bf16 (weights are already bf16), f32 accumulation.
    x_bf = x_ref[...].astype(jnp.bfloat16)
    h_f32 = h_ref[...]
    h_bf = h_f32.astype(jnp.bfloat16)
    gates = (
        jnp.dot(x_bf, wx_ref[...], preferred_element_type=jnp.float32)
        + jnp.dot(h_bf, wh_ref[...], preferred_element_type=jnp.float32)
        + b_ref[...]
    )
    h2 = h_ref.shape[-1]                      # 2*H = 128 (paired hidden width)
    i_g = jax.nn.sigmoid(gates[:, 0 * h2:1 * h2])
    f_g = jax.nn.sigmoid(gates[:, 1 * h2:2 * h2])
    g_g = jnp.tanh(gates[:, 2 * h2:3 * h2])
    o_g = jax.nn.sigmoid(gates[:, 3 * h2:4 * h2])
    c_new = f_g * c_ref[...] + i_g * g_g      # f32 state math
    h_new = o_g * jnp.tanh(c_new)
    cn_ref[...] = c_new                       # lane-dense 128-wide store
    hn_ref[...] = h_new                       # lane-dense 128-wide store
    # Fused fc: block-diagonal weight keeps the paired layout; h_new is still
    # in VMEM so the fc costs no extra HBM traffic.
    out_ref[...] = (
        jnp.dot(h_new.astype(jnp.bfloat16), wfc_ref[...],
                preferred_element_type=jnp.float32)
        + bfc_ref[...]
    )


def prepare_decoder_params(w_ih, w_hh, b_ih, b_hh, w_fc, b_fc):
    """Rearrange PyTorch-layout LSTM/Linear params (weight_ih (4H,In),
    weight_hh (4H,H), biases, fc weight (In,H), fc bias (In,)) into the
    parity-interleaved paired-lane layout used by the kernel, with the matmul
    weights cast to bf16 (biases stay f32). One-time cost."""
    four_h, in_dim = w_ih.shape
    h = four_h // 4
    wx = jnp.transpose(w_ih)                  # (In, 4H), gate order [i|f|g|o]
    wh = jnp.transpose(w_hh)                  # (H, 4H)
    b = b_ih + b_hh                           # (4H,)

    def pairify(w):                           # (K, 4H) -> (2K, 8H)
        k = w.shape[0]
        w2 = jnp.zeros((2 * k, 8 * h), w.dtype)
        for g in range(4):
            blk = w[:, g * h:(g + 1) * h]
            w2 = w2.at[:k, (2 * g) * h:(2 * g + 1) * h].set(blk)
            w2 = w2.at[k:, (2 * g + 1) * h:(2 * g + 2) * h].set(blk)
        return w2

    wx2 = pairify(wx).astype(jnp.bfloat16)                   # (2In, 8H) bf16
    wh2 = pairify(wh).astype(jnp.bfloat16)                   # (2H, 8H) bf16
    b2 = jnp.tile(b.reshape(4, h), (1, 2)).reshape(1, 8 * h)  # (1, 8H) f32

    wfc_t = jnp.transpose(w_fc)                               # (H, In)
    wfc2 = jnp.zeros((2 * h, 2 * in_dim), w_fc.dtype)
    wfc2 = wfc2.at[:h, :in_dim].set(wfc_t)
    wfc2 = wfc2.at[h:, in_dim:].set(wfc_t)                    # (2H, 2In)
    wfc2 = wfc2.astype(jnp.bfloat16)
    bfc2 = jnp.concatenate([b_fc, b_fc]).reshape(1, 2 * in_dim)  # f32
    return wx2, wh2, b2, wfc2, bfc2


def _round_up(n, m):
    return (n + m - 1) // m * m


def decoder_forward(x, hn, cn, params, *, tile_rows=2048):
    """JAX/Pallas port of Decoder.forward (rnn_type='LSTM', 1 layer, unidir).

    x: (B, In) f32; hn, cn: (1, B, H) f32; params from prepare_decoder_params.
    Returns (out, hn_new, cn_new) matching the PyTorch module.
    """
    wx2, wh2, b2, wfc2, bfc2 = params
    B, in_dim = x.shape
    H = hn.shape[-1]

    # Row-pair packing along the 128-lane axis: (B, D) -> (B/2, 2D).  Only an
    # odd B pays a single padded row; there is NO tile-multiple padding (the
    # partial last grid block is handled by Pallas: reads of the tail are
    # garbage but rows are independent, and OOB writes are clipped).
    b_even = B + (B & 1)

    def pairify_rows(a, d):
        if b_even != a.shape[0]:
            a = jnp.pad(a, ((0, b_even - a.shape[0]), (0, 0)))
        return a.reshape(b_even // 2, 2 * d)

    x2 = pairify_rows(x, in_dim)
    h2 = pairify_rows(hn.reshape(B, H), H)
    c2 = pairify_rows(cn.reshape(B, H), H)
    bp = b_even // 2                                      # number of row pairs

    # Tile over row pairs: guarantee >= 2 grid steps when possible (both v7x
    # TensorCores get a "parallel" slice), capped by tile_rows for VMEM
    # (tile_p=2048 f32 row pairs is ~18 MiB live, safe on v7x's 64 MiB).
    half = _round_up(pl.cdiv(bp, 2), 8)
    tile_p = max(8, min(_round_up(tile_rows, 8), half))
    grid = (pl.cdiv(bp, tile_p),)

    def row_spec(last):
        return pl.BlockSpec((tile_p, last), lambda i: (i, 0))

    def full_spec(a):
        return pl.BlockSpec(a.shape, lambda i: (0, 0))

    out2, hn2, cn2 = pl.pallas_call(
        _lstm_step_kernel,
        out_shape=(
            jax.ShapeDtypeStruct((bp, 2 * in_dim), jnp.float32),
            jax.ShapeDtypeStruct((bp, 2 * H), jnp.float32),
            jax.ShapeDtypeStruct((bp, 2 * H), jnp.float32),
        ),
        grid=grid,
        in_specs=[
            row_spec(2 * in_dim),        # x row pairs
            row_spec(2 * H),             # h row pairs (128 lanes)
            row_spec(2 * H),             # c row pairs (128 lanes)
            full_spec(wx2), full_spec(wh2), full_spec(b2),
            full_spec(wfc2), full_spec(bfc2),
        ],
        out_specs=(
            row_spec(2 * in_dim),
            row_spec(2 * H),
            row_spec(2 * H),
        ),
        # In-place state update: h2 -> hn2, c2 -> cn2 (same shape/dtype/spec).
        input_output_aliases={1: 1, 2: 2},
        compiler_params=pltpu.CompilerParams(
            dimension_semantics=("parallel",),
            vmem_limit_bytes=64 * 1024 * 1024),
    )(x2, h2, c2, wx2, wh2, b2, wfc2, bfc2)

    out = out2.reshape(b_even, in_dim)
    hn_new = hn2.reshape(b_even, H)
    cn_new = cn2.reshape(b_even, H)
    if b_even != B:
        out, hn_new, cn_new = out[:B], hn_new[:B], cn_new[:B]
    return out, hn_new.reshape(1, B, H), cn_new.reshape(1, B, H)


if __name__ == "__main__":
    key = jax.random.PRNGKey(0)
    k = jax.random.split(key, 9)

    # Small shapes consistent with the module: one decode step over a
    # flattened (batch*nodes) axis, input_size=4, hidden_size=64 (default).
    # B is odd and non-tile-aligned to exercise the padding-free grid path.
    B, IN, H = 127, 4, 64

    x = jax.random.normal(k[0], (B, IN), jnp.float32)
    hn = jax.random.normal(k[1], (1, B, H), jnp.float32)
    cn = jax.random.normal(k[2], (1, B, H), jnp.float32)

    # PyTorch-layout parameters, deterministic uniform(+-1/sqrt(H)) init.
    bound = float(1.0 / jnp.sqrt(jnp.float32(H)))
    u = lambda kk, shape: jax.random.uniform(kk, shape, jnp.float32, -bound, bound)
    w_ih = u(k[3], (4 * H, IN))
    w_hh = u(k[4], (4 * H, H))
    b_ih = u(k[5], (4 * H,))
    b_hh = u(k[6], (4 * H,))
    w_fc = u(k[7], (IN, H))
    b_fc = u(k[8], (IN,))

    params = prepare_decoder_params(w_ih, w_hh, b_ih, b_hh, w_fc, b_fc)
    decode = jax.jit(decoder_forward)
    out, hn_new, cn_new = decode(x, hn, cn, params)
    jax.block_until_ready((out, hn_new, cn_new))

    # Reference: plain-JAX (f32) PyTorch LSTM single-step + fc semantics.
    h0, c0 = hn[0], cn[0]
    gates = x @ w_ih.T + h0 @ w_hh.T + b_ih + b_hh
    i_g = jax.nn.sigmoid(gates[:, 0 * H:1 * H])
    f_g = jax.nn.sigmoid(gates[:, 1 * H:2 * H])
    g_g = jnp.tanh(gates[:, 2 * H:3 * H])
    o_g = jax.nn.sigmoid(gates[:, 3 * H:4 * H])
    c_ref = f_g * c0 + i_g * g_g
    h_ref = o_g * jnp.tanh(c_ref)
    out_ref = h_ref @ w_fc.T + b_fc

    assert out.shape == (B, IN)
    assert hn_new.shape == (1, B, H) and cn_new.shape == (1, B, H)
    # Tolerance accounts for bf16 matmul operands (f32 accumulation/state).
    assert jnp.allclose(out, out_ref, atol=2e-2, rtol=2e-2), "fc output mismatch"
    assert jnp.allclose(hn_new[0], h_ref, atol=2e-2, rtol=2e-2), "hn mismatch"
    assert jnp.allclose(cn_new[0], c_ref, atol=2e-2, rtol=2e-2), "cn mismatch"

    print("KERNEL_OK")
</pallas_src>

<mosaic_0001>
module attributes {stable_mosaic.version = 11 : i64} {
  func.func @_lstm_step_kernel(%arg0: i32, %arg1: memref<32x8xf32, #tpu.memory_space<vmem>>, %arg2: memref<32x128xf32, #tpu.memory_space<vmem>>, %arg3: memref<32x128xf32, #tpu.memory_space<vmem>>, %arg4: memref<8x512xbf16, #tpu.memory_space<vmem>>, %arg5: memref<128x512xbf16, #tpu.memory_space<vmem>>, %arg6: memref<1x512xf32, #tpu.memory_space<vmem>>, %arg7: memref<128x8xbf16, #tpu.memory_space<vmem>>, %arg8: memref<1x8xf32, #tpu.memory_space<vmem>>, %arg9: memref<32x8xf32, #tpu.memory_space<vmem>>, %arg10: memref<32x128xf32, #tpu.memory_space<vmem>>, %arg11: memref<32x128xf32, #tpu.memory_space<vmem>>) attributes {dimension_semantics = [#tpu.dimension_semantics<parallel>], iteration_bounds = array<i64: 2>, scalar_prefetch = 0 : i64, scratch_operands = 0 : i64, tpu.core_type = #tpu.core_type<tc>, window_params = [{transform_indices = @transform_0, window_bounds = array<i64: 32, 8>}, {transform_indices = @transform_1, window_bounds = array<i64: 32, 128>}, {transform_indices = @transform_2, window_bounds = array<i64: 32, 128>}, {pipeline_mode = #tpu.pipeline_mode<synchronous>, transform_indices = @transform_3, window_bounds = array<i64: 8, 512>}, {pipeline_mode = #tpu.pipeline_mode<synchronous>, transform_indices = @transform_4, window_bounds = array<i64: 128, 512>}, {pipeline_mode = #tpu.pipeline_mode<synchronous>, transform_indices = @transform_5, window_bounds = array<i64: 1, 512>}, {pipeline_mode = #tpu.pipeline_mode<synchronous>, transform_indices = @transform_6, window_bounds = array<i64: 128, 8>}, {pipeline_mode = #tpu.pipeline_mode<synchronous>, transform_indices = @transform_7, window_bounds = array<i64: 1, 8>}, {transform_indices = @transform_8, window_bounds = array<i64: 32, 8>}, {transform_indices = @transform_9, window_bounds = array<i64: 32, 128>}, {transform_indices = @transform_10, window_bounds = array<i64: 32, 128>}]} {
    %c0 = arith.constant 0 : index
    %c0_0 = arith.constant 0 : index
    %0 = vector.load %arg1[%c0, %c0_0] : memref<32x8xf32, #tpu.memory_space<vmem>>, vector<32x8xf32>
    %1 = arith.truncf %0 : vector<32x8xf32> to vector<32x8xbf16>
    %c0_1 = arith.constant 0 : index
    %c0_2 = arith.constant 0 : index
    %2 = vector.load %arg2[%c0_1, %c0_2] : memref<32x128xf32, #tpu.memory_space<vmem>>, vector<32x128xf32>
    %3 = arith.truncf %2 : vector<32x128xf32> to vector<32x128xbf16>
    %c0_3 = arith.constant 0 : index
    %c0_4 = arith.constant 0 : index
    %4 = vector.load %arg4[%c0_3, %c0_4] : memref<8x512xbf16, #tpu.memory_space<vmem>>, vector<8x512xbf16>
    %cst = arith.constant dense<0.000000e+00> : vector<32x512xf32>
    %5 = tpu.matmul %1, %4, %cst {dimension_numbers = #tpu.dot_dimension_numbers<[1], [0], [0], [1], [0, 0, 1, 1], [], []>} : vector<32x8xbf16>, vector<8x512xbf16>, vector<32x512xf32> -> vector<32x512xf32>
    %c0_5 = arith.constant 0 : index
    %c0_6 = arith.constant 0 : index
    %6 = vector.load %arg5[%c0_5, %c0_6] : memref<128x512xbf16, #tpu.memory_space<vmem>>, vector<128x512xbf16>
    %cst_7 = arith.constant dense<0.000000e+00> : vector<32x512xf32>
    %7 = tpu.matmul %3, %6, %cst_7 {dimension_numbers = #tpu.dot_dimension_numbers<[1], [0], [0], [1], [0, 0, 1, 1], [], []>} : vector<32x128xbf16>, vector<128x512xbf16>, vector<32x512xf32> -> vector<32x512xf32>
    %8 = arith.addf %5, %7 : vector<32x512xf32>
    %c0_8 = arith.constant 0 : index
    %c0_9 = arith.constant 0 : index
    %9 = vector.load %arg6[%c0_8, %c0_9] : memref<1x512xf32, #tpu.memory_space<vmem>>, vector<1x512xf32>
    %10 = vector.broadcast %9 : vector<1x512xf32> to vector<32x512xf32>
    %11 = arith.addf %8, %10 : vector<32x512xf32>
    %12 = vector.extract_strided_slice %11 {offsets = [0, 0], sizes = [32, 128], strides = [1, 1]} : vector<32x512xf32> to vector<32x128xf32>
    %13 = arith.negf %12 : vector<32x128xf32>
    %14 = math.exp %13 : vector<32x128xf32>
    %cst_10 = arith.constant 1.000000e+00 : f32
    %15 = vector.broadcast %cst_10 : f32 to vector<32x128xf32>
    %16 = arith.addf %15, %14 : vector<32x128xf32>
    %17 = arith.divf %15, %16 : vector<32x128xf32>
    %18 = vector.extract_strided_slice %11 {offsets = [0, 128], sizes = [32, 128], strides = [1, 1]} : vector<32x512xf32> to vector<32x128xf32>
    %19 = arith.negf %18 : vector<32x128xf32>
    %20 = math.exp %19 : vector<32x128xf32>
    %cst_11 = arith.constant 1.000000e+00 : f32
    %21 = vector.broadcast %cst_11 : f32 to vector<32x128xf32>
    %22 = arith.addf %21, %20 : vector<32x128xf32>
    %23 = arith.divf %21, %22 : vector<32x128xf32>
    %24 = vector.extract_strided_slice %11 {offsets = [0, 256], sizes = [32, 128], strides = [1, 1]} : vector<32x512xf32> to vector<32x128xf32>
    %25 = math.tanh %24 : vector<32x128xf32>
    %26 = vector.extract_strided_slice %11 {offsets = [0, 384], sizes = [32, 128], strides = [1, 1]} : vector<32x512xf32> to vector<32x128xf32>
    %27 = arith.negf %26 : vector<32x128xf32>
    %28 = math.exp %27 : vector<32x128xf32>
    %cst_12 = arith.constant 1.000000e+00 : f32
    %29 = vector.broadcast %cst_12 : f32 to vector<32x128xf32>
    %30 = arith.addf %29, %28 : vector<32x128xf32>
    %31 = arith.divf %29, %30 : vector<32x128xf32>
    %c0_13 = arith.constant 0 : index
    %c0_14 = arith.constant 0 : index
    %32 = vector.load %arg3[%c0_13, %c0_14] : memref<32x128xf32, #tpu.memory_space<vmem>>, vector<32x128xf32>
    %33 = arith.mulf %23, %32 : vector<32x128xf32>
    %34 = arith.mulf %17, %25 : vector<32x128xf32>
    %35 = arith.addf %33, %34 : vector<32x128xf32>
    %36 = math.tanh %35 : vector<32x128xf32>
    %37 = arith.mulf %31, %36 : vector<32x128xf32>
    %c0_15 = arith.constant 0 : index
    %c0_16 = arith.constant 0 : index
    %38 = vector.load %arg11[%c0_15, %c0_16] : memref<32x128xf32, #tpu.memory_space<vmem>>, vector<32x128xf32>
    tpu.vector_store %arg11[%c0_15, %c0_16], %35 {strides = array<i32>} : memref<32x128xf32, #tpu.memory_space<vmem>>, vector<32x128xf32>,
    %c0_17 = arith.constant 0 : index
    %c0_18 = arith.constant 0 : index
    %39 = vector.load %arg10[%c0_17, %c0_18] : memref<32x128xf32, #tpu.memory_space<vmem>>, vector<32x128xf32>
    tpu.vector_store %arg10[%c0_17, %c0_18], %37 {strides = array<i32>} : memref<32x128xf32, #tpu.memory_space<vmem>>, vector<32x128xf32>,
    %40 = arith.truncf %37 : vector<32x128xf32> to vector<32x128xbf16>
    %c0_19 = arith.constant 0 : index
    %c0_20 = arith.constant 0 : index
    %41 = vector.load %arg7[%c0_19, %c0_20] : memref<128x8xbf16, #tpu.memory_space<vmem>>, vector<128x8xbf16>
    %cst_21 = arith.constant dense<0.000000e+00> : vector<32x8xf32>
    %42 = tpu.matmul %40, %41, %cst_21 {dimension_numbers = #tpu.dot_dimension_numbers<[1], [0], [0], [1], [0, 0, 1, 1], [], []>} : vector<32x128xbf16>, vector<128x8xbf16>, vector<32x8xf32> -> vector<32x8xf32>
    %c0_22 = arith.constant 0 : index
    %c0_23 = arith.constant 0 : index
    %43 = vector.load %arg8[%c0_22, %c0_23] : memref<1x8xf32, #tpu.memory_space<vmem>>, vector<1x8xf32>
    %44 = vector.broadcast %43 : vector<1x8xf32> to vector<32x8xf32>
    %45 = arith.addf %42, %44 : vector<32x8xf32>
    %c0_24 = arith.constant 0 : index
    %c0_25 = arith.constant 0 : index
    %46 = vector.load %arg9[%c0_24, %c0_25] : memref<32x8xf32, #tpu.memory_space<vmem>>, vector<32x8xf32>
    tpu.vector_store %arg9[%c0_24, %c0_25], %45 {strides = array<i32>} : memref<32x8xf32, #tpu.memory_space<vmem>>, vector<32x8xf32>,
    return
  }
  func.func @transform_0(%arg0: i32) -> (i32, i32) {
    %c0_i32 = arith.constant 0 : i32
    %c0_i32_0 = arith.constant 0 : i32
    return %arg0, %c0_i32 : i32, i32
  }
  func.func @transform_1(%arg0: i32) -> (i32, i32) {
    %c0_i32 = arith.constant 0 : i32
    %c0_i32_0 = arith.constant 0 : i32
    return %arg0, %c0_i32 : i32, i32
  }
  func.func @transform_2(%arg0: i32) -> (i32, i32) {
    %c0_i32 = arith.constant 0 : i32
    %c0_i32_0 = arith.constant 0 : i32
    return %arg0, %c0_i32 : i32, i32
  }
  func.func @transform_3(%arg0: i32) -> (i32, i32) {
    %c0_i32 = arith.constant 0 : i32
    %c0_i32_0 = arith.constant 0 : i32
    %c0_i32_1 = arith.constant 0 : i32
    return %c0_i32, %c0_i32_0 : i32, i32
  }
  func.func @transform_4(%arg0: i32) -> (i32, i32) {
    %c0_i32 = arith.constant 0 : i32
    %c0_i32_0 = arith.constant 0 : i32
    %c0_i32_1 = arith.constant 0 : i32
    return %c0_i32, %c0_i32_0 : i32, i32
  }
  func.func @transform_5(%arg0: i32) -> (i32, i32) {
    %c0_i32 = arith.constant 0 : i32
    %c0_i32_0 = arith.constant 0 : i32
    %c0_i32_1 = arith.constant 0 : i32
    return %c0_i32, %c0_i32_0 : i32, i32
  }
  func.func @transform_6(%arg0: i32) -> (i32, i32) {
    %c0_i32 = arith.constant 0 : i32
    %c0_i32_0 = arith.constant 0 : i32
    %c0_i32_1 = arith.constant 0 : i32
    return %c0_i32, %c0_i32_0 : i32, i32
  }
  func.func @transform_7(%arg0: i32) -> (i32, i32) {
    %c0_i32 = arith.constant 0 : i32
    %c0_i32_0 = arith.constant 0 : i32
    %c0_i32_1 = arith.constant 0 : i32
    return %c0_i32, %c0_i32_0 : i32, i32
  }
  func.func @transform_8(%arg0: i32) -> (i32, i32) {
    %c0_i32 = arith.constant 0 : i32
    %c0_i32_0 = arith.constant 0 : i32
    return %arg0, %c0_i32 : i32, i32
  }
  func.func @transform_9(%arg0: i32) -> (i32, i32) {
    %c0_i32 = arith.constant 0 : i32
    %c0_i32_0 = arith.constant 0 : i32
    return %arg0, %c0_i32 : i32, i32
  }
  func.func @transform_10(%arg0: i32) -> (i32, i32) {
    %c0_i32 = arith.constant 0 : i32
    %c0_i32_0 = arith.constant 0 : i32
    return %arg0, %c0_i32 : i32, i32
  }
}

</mosaic_0001>

<bundles_post_ra>
// kernel: decoder_forward.1
= control target key start
LH: loop header
LB: loop body
LE: loop exit
PB: predicated region body
PF: predicated region fallthrough
CT: control target
= control target key end

     0   :  { %s1737_s13 = smov 0   ;;  %s2294_s0 = inlined_call_operand.vmem [shape: f32[64,8], index: 0, kind: input, shape index: {}]   ;;  %s2295_s1 = inlined_call_operand.vmem [shape: f32[64,128], index: 1, kind: input, shape index: {}, may-alias: {1,9}]   ;;  %s2296_s2 = inlined_call_operand.vmem [shape: f32[64,128], index: 2, kind: input, shape index: {}, may-alias: {2,10}]   ;;  %s2297_s3 = inlined_call_operand.vmem [shape: bf16[8,512], index: 3, kind: input, shape index: {}]   ;;  %s2298_s4 = inlined_call_operand.vmem [shape: bf16[128,512], index: 4, kind: input, shape index: {}]   ;;  %s2299_s5 = inlined_call_operand.vmem [shape: f32[1,512], index: 5, kind: input, shape index: {}]   ;;  %s2300_s6 = inlined_call_operand.vmem [shape: bf16[128,8], index: 6, kind: input, shape index: {}]   ;;  %s2301_s7 = inlined_call_operand.vmem [shape: f32[1,8], index: 7, kind: input, shape index: {}]   ;;  %s2302_s8 = inlined_call_operand.vmem [shape: f32[64,8], index: 8, kind: output, shape index: {0}]   ;;  %s2303_s9 = inlined_call_operand.vmem [shape: f32[64,128], index: 9, kind: output, shape index: {1}, may-alias: {1,9}]   ;;  %s2304_s10 = inlined_call_operand.vmem [shape: f32[64,128], index: 10, kind: output, shape index: {2}, may-alias: {2,10}]  }
   0x1 LB: > { %s1354_s14 = sadd.s32 4294967295, %s1680_s13   ;;  %p1358_p0 = scmp.ge.s32.totalorder %s1680_s13, 1  ;;  %s1680_s13 = sphi %s1737_s13, %s21_s13  }
   0x2   : > { %p340_p1 = scmp.lt.s32.totalorder %s1680_s13, 3 }
   0x4   : > { %p341_p2 = pnand %p1358_p0, %p340_p1 }
   0x5   : > { %s1359_s17 = sshll.u32 (!%p341_p2), %s1354_s14, 2 }
   0x6   : > { %344 = sbr.rel (%p341_p2) target bundleno = 429 (0x1ad), region = 52  ;;  %p399_p3 = scmp.lt.s32.totalorder (!%p341_p2), %s1359_s17, 7 }
   0xb   : > { %v1485_v0 = vld [vmem:[%s2298_s4 + $0xe0] sm:$0xf]  ;;  %v1583_v1 = vld [vmem:[%s2298_s4 + $0xec] sm:$0xf0]  ;;  %v1581_v2 = vld [vmem:[%s2298_s4 + $0xe4] sm:$0xf] }
   0xc   : > { %v1486_v3 = vor.u32 %v1583_v1, %v1485_v0  ;;  %v1487_v4 = vld [vmem:[%s2298_s4 + $0xf0] sm:$0xf0]  ;;  %v1493_v5 = vld [vmem:[%s2298_s4 + $0xe8] sm:$0xf]  ;;  %v1584_v6 = vld [vmem:[%s2298_s4 + $0xf4] sm:$0xf0] }
   0xd   : > { %v1490_v7 = vor.u32 %v1581_v2, %v1487_v4  ;;  %v1494_v8 = vor.u32 %v1584_v6, %v1493_v5  ;;  %v1582_v9 = vld [vmem:[%s2298_s4 + $0xec] sm:$0xf]  ;;  %v1495_v10 = vld [vmem:[%s2298_s4 + $0xf8] sm:$0xf0]  ;;  %v1469_v11 = vld [vmem:[%s2298_s4 + $0xc0] sm:$0xf] }
   0xe   : > { %641 = vmatpush.bf16.msra.mxu0 %v1486_v3  ;;  %v1498_v12 = vor.u32 %v1582_v9, %v1495_v10  ;;  %v1579_v13 = vld [vmem:[%s2298_s4 + $0xcc] sm:$0xf0]  ;;  %v1577_v14 = vld [vmem:[%s2298_s4 + $0xc4] sm:$0xf]  ;;  %v1471_v15 = vld [vmem:[%s2298_s4 + $0xd0] sm:$0xf0] }
   0xf   : > { %660 = vmatpush.bf16.msra.mxu1 %v1490_v7  ;;  %679 = vmatpush.bf16.msra.mxu2 %v1494_v8  ;;  %v1470_v16 = vor.u32 %v1579_v13, %v1469_v11  ;;  %v1474_v17 = vor.u32 %v1577_v14, %v1471_v15  ;;  %v1477_v18 = vld [vmem:[%s2298_s4 + $0xc8] sm:$0xf]  ;;  %v1580_v19 = vld [vmem:[%s2298_s4 + $0xd4] sm:$0xf0]  ;;  %v1578_v20 = vld [vmem:[%s2298_s4 + $0xcc] sm:$0xf] }
  0x10   : > { %698 = vmatpush.bf16.msra.mxu3 %v1498_v12  ;;  %v1478_v21 = vor.u32 %v1580_v19, %v1477_v18  ;;  %v1479_v22 = vld [vmem:[%s2298_s4 + $0xd8] sm:$0xf0]  ;;  %v1453_v23 = vld [vmem:[%s2298_s4 + $0xa0] sm:$0xf]  ;;  %v1575_v24 = vld [vmem:[%s2298_s4 + $0xac] sm:$0xf0] }
  0x11   : > { %v1482_v25 = vor.u32 %v1578_v20, %v1479_v22  ;;  %v1573_v26 = vld [vmem:[%s2298_s4 + $0xa4] sm:$0xf]  ;;  %v1455_v27 = vld [vmem:[%s2298_s4 + $0xb0] sm:$0xf0]  ;;  %v1461_v28 = vld [vmem:[%s2298_s4 + $0xa8] sm:$0xf]  ;;  %v1454_v29 = vor.u32 %v1575_v24, %v1453_v23 }
  0x12   : > { %642 = vmatpush.bf16.msra.mxu0 %v1470_v16  ;;  %v1576_v30 = vld [vmem:[%s2298_s4 + $0xb4] sm:$0xf0]  ;;  %v1574_v31 = vld [vmem:[%s2298_s4 + $0xac] sm:$0xf]  ;;  %v1463_v32 = vld [vmem:[%s2298_s4 + $0xb8] sm:$0xf0]  ;;  %v1458_v33 = vor.u32 %v1573_v26, %v1455_v27 }
  0x13   : > { %661 = vmatpush.bf16.msra.mxu1 %v1474_v17  ;;  %680 = vmatpush.bf16.msra.mxu2 %v1478_v21  ;;  %v1462_v34 = vor.u32 %v1576_v30, %v1461_v28  ;;  %v1437_v35 = vld [vmem:[%s2298_s4 + $0x80] sm:$0xf]  ;;  %v1571_v36 = vld [vmem:[%s2298_s4 + $0x8c] sm:$0xf0]  ;;  %v1569_v37 = vld [vmem:[%s2298_s4 + $0x84] sm:$0xf]  ;;  %v1466_v38 = vor.u32 %v1574_v31, %v1463_v32 }
  0x14   : > { %699 = vmatpush.bf16.msra.mxu3 %v1482_v25  ;;  %v1439_v39 = vld [vmem:[%s2298_s4 + $0x90] sm:$0xf0]  ;;  %v1445_v40 = vld [vmem:[%s2298_s4 + $0x88] sm:$0xf]  ;;  %v1572_v41 = vld [vmem:[%s2298_s4 + $0x94] sm:$0xf0]  ;;  %v1438_v44 = vor.u32 %v1571_v36, %v1437_v35 }
  0x15   : > { %v1570_v42 = vld [vmem:[%s2298_s4 + $0x8c] sm:$0xf]  ;;  %v1447_v43 = vld [vmem:[%s2298_s4 + $0x98] sm:$0xf0]  ;;  %v1442_v45 = vor.u32 %v1569_v37, %v1439_v39  ;;  %v1446_v46 = vor.u32 %v1572_v41, %v1445_v40  ;;  %v1421_v47 = vld [vmem:[%s2298_s4 + $0x60] sm:$0xf] }
  0x16   : > { %643 = vmatpush.bf16.msra.mxu0 %v1454_v29  ;;  %v1567_v48 = vld [vmem:[%s2298_s4 + $0x6c] sm:$0xf0]  ;;  %v1565_v49 = vld [vmem:[%s2298_s4 + $0x64] sm:$0xf]  ;;  %v1450_v50 = vor.u32 %v1570_v42, %v1447_v43  ;;  %v1423_v51 = vld [vmem:[%s2298_s4 + $0x70] sm:$0xf0] }
  0x17   : > { %662 = vmatpush.bf16.msra.mxu1 %v1458_v33  ;;  %681 = vmatpush.bf16.msra.mxu2 %v1462_v34  ;;  %v1429_v52 = vld [vmem:[%s2298_s4 + $0x68] sm:$0xf]  ;;  %v1568_v53 = vld [vmem:[%s2298_s4 + $0x74] sm:$0xf0]  ;;  %v1566_v54 = vld [vmem:[%s2298_s4 + $0x6c] sm:$0xf]  ;;  %v1422_v56 = vor.u32 %v1567_v48, %v1421_v47  ;;  %v1426_v57 = vor.u32 %v1565_v49, %v1423_v51 }
  0x18   : > { %700 = vmatpush.bf16.msra.mxu3 %v1466_v38  ;;  %v1431_v55 = vld [vmem:[%s2298_s4 + $0x78] sm:$0xf0]  ;;  %v1430_v58 = vor.u32 %v1568_v53, %v1429_v52  ;;  %v1405_v59 = vld [vmem:[%s2298_s4 + $0x40] sm:$0xf]  ;;  %v1563_v60 = vld [vmem:[%s2298_s4 + $0x4c] sm:$0xf0] }
  0x19   : > { %v1561_v61 = vld [vmem:[%s2298_s4 + $0x44] sm:$0xf]  ;;  %v1434_v62 = vor.u32 %v1566_v54, %v1431_v55  ;;  %v1407_v63 = vld [vmem:[%s2298_s4 + $0x50] sm:$0xf0]  ;;  %v1413_v0 = vld [vmem:[%s2298_s4 + $0x48] sm:$0xf]  ;;  %v1406_v4 = vor.u32 %v1563_v60, %v1405_v59 }
  0x1a   : > { %644 = vmatpush.bf16.msra.mxu0 %v1438_v44  ;;  %v1564_v1 = vld [vmem:[%s2298_s4 + $0x54] sm:$0xf0]  ;;  %v1562_v2 = vld [vmem:[%s2298_s4 + $0x4c] sm:$0xf]  ;;  %v1415_v3 = vld [vmem:[%s2298_s4 + $0x58] sm:$0xf0]  ;;  %v1410_v7 = vor.u32 %v1561_v61, %v1407_v63 }
  0x1b   : > { %663 = vmatpush.bf16.msra.mxu1 %v1442_v45  ;;  %682 = vmatpush.bf16.msra.mxu2 %v1446_v46  ;;  %v1389_v5 = vld [vmem:[%s2298_s4 + $0x20] sm:$0xf]  ;;  %v1559_v6 = vld [vmem:[%s2298_s4 + $0x2c] sm:$0xf0]  ;;  %v1414_v8 = vor.u32 %v1564_v1, %v1413_v0  ;;  %v1557_v9 = vld [vmem:[%s2298_s4 + $0x24] sm:$0xf]  ;;  %v1418_v12 = vor.u32 %v1562_v2, %v1415_v3 }
  0x1c   : > { %701 = vmatpush.bf16.msra.mxu3 %v1450_v50  ;;  %v1391_v10 = vld [vmem:[%s2298_s4 + $0x30] sm:$0xf0]  ;;  %v1397_v11 = vld [vmem:[%s2298_s4 + $0x28] sm:$0xf]  ;;  %v1560_v13 = vld [vmem:[%s2298_s4 + $0x34] sm:$0xf0]  ;;  %v1390_v19 = vor.u32 %v1559_v6, %v1389_v5 }
  0x1d   : > { %v1558_v14 = vld [vmem:[%s2298_s4 + $0x2c] sm:$0xf]  ;;  %v447_v15 = vld [vmem:[%s2297_s3] sm:$0xff]  ;;  %v1399_v16 = vld [vmem:[%s2298_s4 + $0x38] sm:$0xf0]  ;;  %v1394_v22 = vor.u32 %v1557_v9, %v1391_v10  ;;  %v1398_v23 = vor.u32 %v1560_v13, %v1397_v11  ;;  %s2324_s17 = smov (!%p399_p3, %s1359_s17), 7 }
  0x1e   : > { %645 = vmatpush.bf16.msra.mxu0 %v1422_v56  ;;  %v719_v17 = vunpack.c.l.b16 %v447_v15  ;;  %v448_v18 = vld [vmem:[%s2297_s3 + $0x8] sm:$0xff]  ;;  %v1373_v20 = vld [vmem:[%s2298_s4] sm:$0xf]  ;;  %v720_v21 = vunpack.c.h.b16 %v447_v15  ;;  %v1555_v24 = vld [vmem:[%s2298_s4 + $0xc] sm:$0xf0]  ;;  %v1402_v26 = vor.u32 %v1558_v14, %v1399_v16  ;;  %s1945_s22 = sshll.u32 %s2324_s17, 3 }
  0x1f   : > { %664 = vmatpush.bf16.msra.mxu1 %v1426_v57  ;;  %683 = vmatpush.bf16.msra.mxu2 %v1430_v58  ;;  %v1553_v25 = vld [vmem:[%s2298_s4 + $0x4] sm:$0xf]  ;;  %v1375_v27 = vld [vmem:[%s2298_s4 + $0x10] sm:$0xf0]  ;;  %v1381_v28 = vld [vmem:[%s2298_s4 + $0x8] sm:$0xf]  ;;  %v721_v30 = vunpack.c.l.b16 %v448_v18  ;;  %v722_v34 = vunpack.c.h.b16 %v448_v18  ;;  %v1374_v35 = vor.u32 %v1555_v24, %v1373_v20  ;;  %s1951_s25 = scalar_lea.vmem %s2295_s1, %s1945_s22  ;;  %s402_s26 = scalar_lea.vmem %s2294_s0, %s1945_s22 }
  0x20   : > { %702 = vmatpush.bf16.msra.mxu3 %v1434_v62  ;;  %v1556_v29 = vld [vmem:[%s2298_s4 + $0x14] sm:$0xf0]  ;;  %v1554_v31 = vld [vmem:[%s2298_s4 + $0xc] sm:$0xf]  ;;  %v1383_v32 = vld [vmem:[%s2298_s4 + $0x18] sm:$0xf0]  ;;  %v723_v33 = vpack.c.b16 %v719_v17, %v719_v17  ;;  %v724_v36 = vpack.c.b16 %v720_v21, %v720_v21  ;;  %v1378_v37 = vor.u32 %v1553_v25, %v1375_v27  ;;  %s2125_s30 = scalar_lea.vmem %s2304_s10, %s1945_s22  ;;  %s2247_s18 = scalar_lea.vmem %s2303_s9, %s1945_s22 }
  0x21   : > { %vm734_vm0 = vcmask 1043456   ;;  %v1382_v38 = vor.u32 %v1556_v29, %v1381_v28  ;;  %v441_v39 = vld [vmem:[%s1951_s25] sm:$0xff]  ;;  %v442_v40 = vld [vmem:[%s1951_s25 + $0x8] sm:$0xff]  ;;  %v1386_v41 = vor.u32 %v1554_v31, %v1383_v32  ;;  %v725_v42 = vpack.c.b16 %v721_v30, %v721_v30  ;;  %v443_v49 = vld [vmem:[%s1951_s25 + $0x10] sm:$0xff]  ;;  %s420_s24 = scalar_lea.vmem %s2302_s8, %s1945_s22 }
  0x22   : > { %646 = vmatpush.bf16.msra.mxu0 %v1406_v4  ;;  %v445_v43 = vpack.c.bf16 %v442_v40, %v441_v39  ;;  %v736_v44 = vsel %vm734_vm0, %v723_v33, 0  ;;  %v726_v45 = vpack.c.b16 %v722_v34, %v722_v34  ;;  %v739_v46 = vsel %vm734_vm0, %v724_v36, 0  ;;  %v444_v50 = vld [vmem:[%s1951_s25 + $0x18] sm:$0xff]  ;;  %v435_v52 = vld [vmem:[%s402_s26] sm:$0xff]  ;;  %v436_v53 = vld [vmem:[%s402_s26 + $0x8] sm:$0xff]  ;;  %s2055_s25 = scalar_lea.vmem %s2296_s2, %s1945_s22 }
  0x23   : > { %665 = vmatpush.bf16.msra.mxu1 %v1410_v7  ;;  %684 = vmatpush.bf16.msra.mxu2 %v1414_v8  ;;  %v742_v47 = vsel %vm734_vm0, %v725_v42, 0  ;;  %v446_v51 = vpack.c.bf16 %v444_v50, %v443_v49  ;;  %v439_v54 = vpack.c.bf16 %v436_v53, %v435_v52  ;;  %vm727_vm1 = vcmask 64512   ;;  %v437_v55 = vld [vmem:[%s402_s26 + $0x10] sm:$0xff]  ;;  %v438_v56 = vld [vmem:[%s402_s26 + $0x18] sm:$0xff]  ;;  %v823_v8 = vld [vmem:[%s2299_s5] sm:$0xf] }
  0x24   : > { %703 = vmatpush.bf16.msra.mxu3 %v1418_v12  ;;  %v745_v48 = vsel %vm734_vm0, %v726_v45, 0  ;;  %v440_v57 = vpack.c.bf16 %v438_v56, %v437_v55  ;;  %v1988_v10 = vperm.slane %v823_v8, 0  ;;  %v1992_v13 = vperm.slane %v823_v8, 1  ;;  %v1592_v29 = vld [vmem:[%s2300_s6 + $0x38] sm:$0xff]  ;;  %v1591_v40 = vld [vmem:[%s2300_s6 + $0x30] sm:$0xff] }
  0x26   : > { %647 = vmatpush.bf16.msra.mxu0 %v1390_v19 }
  0x27   : > { %666 = vmatpush.bf16.msra.mxu1 %v1394_v22  ;;  %685 = vmatpush.bf16.msra.mxu2 %v1398_v23  ;;  %v1996_v22 = vperm.slane %v823_v8, 3 }
  0x28   : > { %704 = vmatpush.bf16.msra.mxu3 %v1402_v26 }
  0x2a   : > { %648 = vmatpush.bf16.msra.mxu0 %v1374_v35  ;;  %v2004_v35 = vperm.slane %v823_v8, 2 }
  0x2b   : > { %667 = vmatpush.bf16.msra.mxu1 %v1378_v37  ;;  %686 = vmatpush.bf16.msra.mxu2 %v1382_v38 }
  0x2c   : > { %705 = vmatpush.bf16.msra.mxu3 %v1386_v41 }
  0x2d   : > { %649 = vmatmul.bf16.vlgmr.msra.gmra.mxu0 %v445_v43 }
  0x2e   : > { %754 = vmatpush.bf16.msrb.mxu0 %v736_v44  ;;  %668 = vmatmul.bf16.vlgmr.msra.gmra.mxu1 %v445_v43 }
  0x2f   : > { %773 = vmatpush.bf16.msrb.mxu1 %v739_v46  ;;  %687 = vmatmul.bf16.vlgmr.msra.gmra.mxu2 %v445_v43 }
  0x30   : > { %706 = vmatmul.bf16.vlgmr.msra.gmra.mxu3 %v445_v43  ;;  %792 = vmatpush.bf16.msrb.mxu2 %v742_v47 }
  0x31   : > { %811 = vmatpush.bf16.msrb.mxu3 %v745_v48  ;;  %v1590_v48 = vld [vmem:[%s2300_s6 + $0x28] sm:$0xff] }
  0x32   : > { %1183 = vmatpush.bf16.msra.mxu0 %v1592_v29 }
  0x33   : > { %1593 = vmatpush.bf16.msra.mxu1 %v1592_v29 }
  0x36   : > { %1184 = vmatpush.bf16.msra.mxu0 %v1591_v40 }
  0x37   : > { %1594 = vmatpush.bf16.msra.mxu1 %v1591_v40  ;;  %v1081_v40 = vld [vmem:[%s2055_s25] sm:$0xff] }
  0x3a   : > { %1185 = vmatpush.bf16.msra.mxu0 %v1590_v48 }
  0x3b   : > { %1595 = vmatpush.bf16.msra.mxu1 %v1590_v48 }
  0x3d   : > { %654 = vmatmul.bf16.gmra.mxu0 %v446_v51 }
  0x3e   : > { %673 = vmatmul.bf16.gmra.mxu1 %v446_v51 }
  0x3f   : > { %692 = vmatmul.bf16.gmra.mxu2 %v446_v51 }
  0x40   : > { %711 = vmatmul.bf16.gmra.mxu3 %v446_v51 }
  0x4d   : > { %1499 = vmatmul.msk.bf16.vlgmr.msrb.gmra.mxu0 %vm727_vm1, %v439_v54 }
  0x4e   : > { %1501 = vmatmul.msk.bf16.vlgmr.msrb.gmra.mxu1 %vm727_vm1, %v439_v54 }
  0x4f   : > { %1503 = vmatmul.msk.bf16.vlgmr.msrb.gmra.mxu2 %vm727_vm1, %v439_v54 }
  0x50   : > { %1505 = vmatmul.msk.bf16.vlgmr.msrb.gmra.mxu3 %vm727_vm1, %v439_v54 }
  0x5d   : > { %1500 = vmatmul.msk.bf16.gmra.mxu0 %vm727_vm1, %v440_v57 }
  0x5e   : > { %1502 = vmatmul.msk.bf16.gmra.mxu1 %vm727_vm1, %v440_v57 }
  0x5f   : > { %1504 = vmatmul.msk.bf16.gmra.mxu2 %vm727_vm1, %v440_v57 }
  0x60   : > { %1506 = vmatmul.msk.bf16.gmra.mxu3 %vm727_vm1, %v440_v57 }
  0xaa   : > { %v650_v58 = vpop.f32.mrf.mxu0 }
  0xab   : > { %v669_v59 = vpop.f32.mrf.mxu1 }
  0xb2   : > { %v688_v60 = vpop.f32.mrf.mxu2  ;;  %v652_v62 = vpop.f32.mrf.mxu0 }
  0xb3   : > { %v707_v61 = vpop.f32.mrf.mxu3  ;;  %v671_v63 = vpop.f32.mrf.mxu1 }
  0xba   : > { %v1973_v0 = vpop.f32.mrf.mxu2  ;;  %v655_v2 = vpop.f32.mrf.mxu0 }
  0xbb   : > { %v709_v1 = vpop.f32.mrf.mxu3  ;;  %v674_v3 = vpop.f32.mrf.mxu1 }
  0xc2   : > { %v1975_v4 = vpop.f32.mrf.mxu2  ;;  %v1979_v6 = vpop.f32.mrf.mxu0 }
  0xc3   : > { %v1977_v5 = vpop.f32.mrf.mxu3  ;;  %v1981_v7 = vpop.f32.mrf.mxu1 }
  0xca   : > { %v1986_v9 = vpop.f32.mrf.mxu2  ;;  %v756_v12 = vpop.f32.mrf.mxu0 }
  0xcb   : > { %v1990_v11 = vpop.f32.mrf.mxu3  ;;  %v757_v14 = vadd.f32 %v756_v12, %v650_v58  ;;  %v775_v15 = vpop.f32.mrf.mxu1 }
  0xcc   : > { %v776_v16 = vadd.f32 %v775_v15, %v669_v59  ;;  %v1589_v59 = vld [vmem:[%s2300_s6 + $0x20] sm:$0xff] }
  0xcd   : > { %v833_v17 = vadd.f32 %v1988_v10, %v757_v14  ;;  %1186 = vmatpush.bf16.msra.mxu0 %v1589_v59  ;;  %1596 = vmatpush.bf16.msra.mxu1 %v1589_v59  ;;  %v1586_v59 = vld [vmem:[%s2300_s6 + $0x8] sm:$0xff] }
  0xce   : > { %v834_v18 = vadd.f32 %v1992_v13, %v776_v16 }
  0xcf   : > { %v1507_v19 = vmul.f32 -1.442695, %v833_v17 }
  0xd0   : > { %v1511_v20 = vmul.f32 -1.442695, %v834_v18 }
  0xd1   : > { %1610 = vpow2.f32 %v1507_v19 }
  0xd2   : > { %v794_v21 = vpop.f32.mrf.mxu2  ;;  %1612 = vpow2.f32 %v1511_v20  ;;  %v758_v24 = vpop.f32.mrf.mxu0  ;;  %v1588_v20 = vld [vmem:[%s2300_s6 + $0x18] sm:$0xff] }
  0xd3   : > { %v813_v23 = vpop.f32.mrf.mxu3  ;;  %v759_v26 = vadd.f32 %v758_v24, %v652_v62  ;;  %v777_v27 = vpop.f32.mrf.mxu1  ;;  %v795_v34 = vadd.f32 %v794_v21, %v688_v60  ;;  %1187 = vmatpush.bf16.msra.mxu0 %v1588_v20  ;;  %1597 = vmatpush.bf16.msra.mxu1 %v1588_v20 }
  0xd4   : > { %v814_v25 = vadd.f32 %v813_v23, %v707_v61  ;;  %v778_v28 = vadd.f32 %v777_v27, %v671_v63 }
  0xd5   : > { %v837_v31 = vadd.f32 %v1988_v10, %v759_v26  ;;  %v835_v45 = vadd.f32 %v2004_v35, %v795_v34 }
  0xd6   : > { %v836_v30 = vadd.f32 %v1996_v22, %v814_v25  ;;  %v838_v32 = vadd.f32 %v1992_v13, %v778_v28 }
  0xd7   : > { %v1611_v33 = vpop.eup %1610  ;;  %v1508_v39 = vmul.f32 -1.442695, %v837_v31 }
  0xd8   : > { %v1515_v36 = vmul.f32 -1.442695, %v836_v30  ;;  %v1613_v37 = vpop.eup %1612  ;;  %v2006_v38 = vadd.f32 1.0, %v1611_v33  ;;  %v1512_v42 = vmul.f32 -1.442695, %v838_v32 }
  0xd9   : > { %v2011_v41 = vadd.f32 1.0, %v1613_v37 }
  0xda   : > { %1614 = vpow2.f32 %v1515_v36  ;;  %v796_v43 = vpop.f32.mrf.mxu2  ;;  %v761_v46 = vpop.f32.mrf.mxu0  ;;  %vm870_vm2 = vweird.f32 %v2006_v38  ;;  %v874_v55 = vand.u32 2147483647, %v2006_v38  ;;  %v876_v62 = vand.u32 2147483648, %v2006_v38  ;;  %v1587_v36 = vld [vmem:[%s2300_s6 + $0x10] sm:$0xff] }
  0xdb   : > { %1616 = vrcp.f32 %v2006_v38  ;;  %v815_v44 = vpop.f32.mrf.mxu3  ;;  %v780_v47 = vpop.f32.mrf.mxu1  ;;  %v762_v50 = vadd.f32 %v761_v46, %v655_v2  ;;  %v797_v63 = vadd.f32 %v796_v43, %v1973_v0  ;;  %v952_v8 = vand.u32 2147483648, %v2011_v41  ;;  %1188 = vmatpush.bf16.msra.mxu0 %v1587_v36  ;;  %1598 = vmatpush.bf16.msra.mxu1 %v1587_v36 }
  0xdc   : > { %1618 = vrcp.f32 %v2011_v41  ;;  %v816_v49 = vadd.f32 %v815_v44, %v709_v1  ;;  %v781_v51 = vadd.f32 %v780_v47, %v674_v3  ;;  %v950_v16 = vand.u32 2147483647, %v2011_v41 }
  0xdd   : > { %1620 = vpow2.f32 %v1508_v39  ;;  %v841_v57 = vadd.f32 %v1988_v10, %v762_v50  ;;  %v839_v24 = vadd.f32 %v2004_v35, %v797_v63  ;;  %vm946_vm4 = vweird.f32 %v2011_v41  ;;  %v1082_v63 = vld [vmem:[%s2055_s25 + $0x8] sm:$0xff] }
  0xde   : > { %1622 = vpow2.f32 %v1512_v42  ;;  %v840_v53 = vadd.f32 %v1996_v22, %v816_v49  ;;  %v842_v58 = vadd.f32 %v1992_v13, %v781_v51  ;;  %v953_v27 = vor.u32 1.1754944e-38, %v952_v8 }
  0xdf   : > { %1624 = vtanh.f32 %v835_v45  ;;  %v1509_v12 = vmul.f32 -1.442695, %v841_v57  ;;  %vm2058_vm6 = vcmp.eq.f32.partialorder %v874_v55, 8.507059e+37  ;;  %v877_v30 = vor.u32 1.1754944e-38, %v876_v62  ;;  %1189 = vmatpush.bf16.msra.mxu0 %v1586_v59  ;;  %1599 = vmatpush.bf16.msra.mxu1 %v1586_v59 }
  0xe0   : > { %v1615_v52 = vpop.eup %1614  ;;  %v1516_v1 = vmul.f32 -1.442695, %v840_v53  ;;  %v1513_v19 = vmul.f32 -1.442695, %v842_v58  ;;  %vm951_vm9 = vcmp.eq.f32.partialorder %v950_v16, 8.507059e+37 }
  0xe1   : > { %v1617_v54 = vpop.eup %1616  ;;  %v2022_v56 = vadd.f32 1.0, %v1615_v52 }
  0xe2   : > { %v2029_v60 = vpop.eup %1618  ;;  %v866_v61 = vmul.f32 %v1617_v54, %v2006_v38  ;;  %vm871_vm3 = vweird.f32 %v1617_v54  ;;  %v799_v25 = vpop.f32.mrf.mxu2 }
  0xe3   : > { %v1621_v2 = vpop.eup %1620  ;;  %v942_v3 = vmul.f32 %v2029_v60, %v2011_v41  ;;  %1626 = vrcp.f32 %v2022_v56  ;;  %vm947_vm5 = vweird.f32 %v2029_v60  ;;  %vm872_vm7 = vmor %vm870_vm2, %vm871_vm3  ;;  %v800_v34 = vadd.f32 %v799_v25, %v1975_v4  ;;  %v818_v57 = vpop.f32.mrf.mxu3  ;;  %v1585_v25 = vld [vmem:[%s2300_s6] sm:$0xff] }
  0xe4   : > { %v1623_v14 = vpop.eup %1622  ;;  %v867_v15 = vsub.f32 1.0, %v866_v61  ;;  %v2039_v17 = vadd.f32 1.0, %v1621_v2  ;;  %1628 = vpow2.f32 %v1516_v1  ;;  %vm2077_vm8 = vmor %vm946_vm4, %vm947_vm5  ;;  %v763_v58 = vpop.f32.mrf.mxu0  ;;  %v2119_v1 = vld [vmem:[%s2055_s25 + $0x10] sm:$0xff]  ;;  %v2128_v2 = vld [vmem:[%s2055_s25 + $0x18] sm:$0xff]  ;;  %1190 = vmatpush.bf16.msra.mxu0 %v1585_v25  ;;  %1600 = vmatpush.bf16.msra.mxu1 %v1585_v25 }
  0xe5   : > { %v943_v0 = vsub.f32 1.0, %v942_v3  ;;  %v2041_v18 = vadd.f32 1.0, %v1623_v14  ;;  %1630 = vpow2.f32 %v1509_v12  ;;  %v1625_v21 = vpop.eup %1624  ;;  %v843_v55 = vadd.f32 %v2004_v35, %v800_v34 }
  0xe6   : > { %v868_v23 = vmul.f32 %v1617_v54, %v867_v15  ;;  %1632 = vrcp.f32 %v2039_v17  ;;  %v889_v33 = vand.u32 2147483647, %v2039_v17  ;;  %vm885_vm10 = vweird.f32 %v2039_v17 }
  0xe7   : > { %v944_v26 = vmul.f32 %v2029_v60, %v943_v0  ;;  %1634 = vrcp.f32 %v2041_v18  ;;  %v967_v42 = vand.u32 2147483648, %v2041_v18  ;;  %v891_v41 = vand.u32 2147483648, %v2039_v17 }
  0xe8   : > { %v869_v28 = vadd.f32 %v1617_v54, %v868_v23  ;;  %1636 = vpow2.f32 %v1513_v19  ;;  %vm961_vm11 = vweird.f32 %v2041_v18  ;;  %vm2101_vm12 = vcmp.eq.f32.partialorder %v889_v33, 8.507059e+37 }
  0xe9   : > { %v2062_v31 = vpop.eup %1626  ;;  %v945_v32 = vadd.f32 %v2029_v60, %v944_v26  ;;  %1638 = vtanh.f32 %v839_v24  ;;  %v968_v62 = vor.u32 1.1754944e-38, %v967_v42  ;;  %v892_v14 = vor.u32 1.1754944e-38, %v891_v41  ;;  %v782_v24 = vpop.f32.mrf.mxu1 }
  0xea   : > { %v1629_v37 = vpop.eup %1628  ;;  %v873_v38 = vsel %vm872_vm7, %v1617_v54, %v869_v28  ;;  %v965_v54 = vand.u32 2147483647, %v2041_v18  ;;  %v819_v19 = vadd.f32 %v818_v57, %v1977_v5  ;;  %v764_v20 = vadd.f32 %v763_v58, %v1979_v6 }
  0xeb   : > { %v1631_v4 = vpop.eup %1630  ;;  %v878_v43 = vsel %vm2058_vm6, %v877_v30, %v873_v38  ;;  %v949_v44 = vsel %vm2077_vm8, %v2029_v60, %v945_v32  ;;  %v2090_v45 = vadd.f32 1.0, %v1629_v37  ;;  %v2112_v60 = vmul.f32 %v2062_v31, %v2022_v56  ;;  %v820_v41 = vpop.f32.mrf.mxu3 }
  0xec   : > { %v2092_v46 = vpop.eup %1632  ;;  %v954_v47 = vsel %vm951_vm9, %v953_v27, %v949_v44  ;;  %v1089_v48 = vmul.f32 %v1625_v21, %v878_v43  ;;  %v2095_v49 = vadd.f32 1.0, %v1631_v4  ;;  %vm2144_vm15 = vcmp.eq.f32.partialorder %v965_v54, 8.507059e+37 }
  0xed   : > { %v2097_v50 = vpop.eup %1634  ;;  %v1085_v51 = vmul.f32 %v1081_v40, %v954_v47  ;;  %v881_v52 = vmul.f32 %v2092_v46, %v2039_v17  ;;  %vm886_vm13 = vweird.f32 %v2092_v46  ;;  %v1023_v6 = vsub.f32 1.0, %v2112_v60 }
  0xee   : > { %v957_v61 = vmul.f32 %v2097_v50, %v2041_v18  ;;  %1640 = vrcp.f32 %v2095_v49  ;;  %v1637_v3 = vpop.eup %1636  ;;  %v904_v23 = vand.u32 2147483647, %v2095_v49  ;;  %vm962_vm14 = vweird.f32 %v2097_v50  ;;  %vm887_vm0 = vmor %vm885_vm10, %vm886_vm13 }
  0xef   : > { %v1093_v8 = vadd.f32 %v1089_v48, %v1085_v51  ;;  %v882_v12 = vsub.f32 1.0, %v881_v52  ;;  %1642 = vrcp.f32 %v2090_v45  ;;  %v1639_v15 = vpop.eup %1638  ;;  %v2131_v0 = vadd.f32 1.0, %v1637_v3  ;;  %vm963_vm3 = vmor %vm961_vm11, %vm962_vm14 }
  0xf0   : > { %v958_v16 = vsub.f32 1.0, %v957_v61  ;;  %1644 = vtanh.f32 %v843_v55  ;;  %v844_v28 = vadd.f32 %v1996_v22, %v819_v19  ;;  %v845_v29 = vadd.f32 %v1988_v10, %v764_v20 }
  0xf1   : > { %v883_v21 = vmul.f32 %v2092_v46, %v882_v12  ;;  %1105 = vst [vmem:[%s2125_s30] sm:$0xff] %v1093_v8  ;;  %1646 = vrcp.f32 %v2131_v0  ;;  %vm900_vm2 = vweird.f32 %v2095_v49  ;;  %v906_v33 = vand.u32 2147483648, %v2095_v49 }
  0xf2   : > { %v959_v26 = vmul.f32 %v2097_v50, %v958_v16  ;;  %v783_v34 = vadd.f32 %v782_v24, %v1981_v7  ;;  %1648 = vtanh.f32 %v1093_v8  ;;  %vm2169_vm4 = vcmp.eq.f32.partialorder %v904_v23, 8.507059e+37  ;;  %v801_v23 = vpop.f32.mrf.mxu2 }
  0xf3   : > { %v884_v27 = vadd.f32 %v2092_v46, %v883_v21  ;;  %v982_v38 = vand.u32 2147483648, %v2131_v0  ;;  %v1517_v40 = vmul.f32 -1.442695, %v844_v28  ;;  %v1510_v44 = vmul.f32 -1.442695, %v845_v29 }
  0xf4   : > { %v1641_v30 = vpop.eup %1640  ;;  %v960_v32 = vadd.f32 %v2097_v50, %v959_v26  ;;  %v846_v51 = vadd.f32 %v1992_v13, %v783_v34  ;;  %v980_v54 = vand.u32 2147483647, %v2131_v0  ;;  %v821_v57 = vadd.f32 %v820_v41, %v1990_v11 }
  0xf5   : > { %v2161_v36 = vpop.eup %1642  ;;  %v888_v10 = vsel %vm887_vm0, %v2092_v46, %v884_v27  ;;  %v896_v17 = vmul.f32 %v1641_v30, %v2095_v49  ;;  %1650 = vpow2.f32 %v1517_v40  ;;  %vm901_vm5 = vweird.f32 %v1641_v30 }
  0xf6   : > { %v893_v39 = vsel %vm2101_vm12, %v892_v14, %v888_v10  ;;  %v964_v7 = vsel %vm963_vm3, %v2097_v50, %v960_v32  ;;  %v1645_v42 = vpop.eup %1644  ;;  %v1037_v48 = vmul.f32 %v2161_v36, %v2090_v45  ;;  %1652 = vpow2.f32 %v1510_v44  ;;  %vm902_vm7 = vmor %vm900_vm2, %vm901_vm5 }
  0xf7   : > { %v969_v18 = vsel %vm2144_vm15, %v968_v62, %v964_v7  ;;  %v1090_v4 = vmul.f32 %v1639_v15, %v893_v39  ;;  %v897_v43 = vsub.f32 1.0, %v896_v17  ;;  %v1647_v46 = vpop.eup %1646  ;;  %v1514_v55 = vmul.f32 -1.442695, %v846_v51 }
  0xf8   : > { %v1086_v47 = vmul.f32 %v1082_v63, %v969_v18  ;;  %v972_v50 = vmul.f32 %v1647_v46, %v2131_v0  ;;  %v2185_v58 = vpop.eup %1648  ;;  %v907_v61 = vor.u32 1.1754944e-38, %v906_v33  ;;  %v1024_v62 = vmul.f32 %v2062_v31, %v1023_v6 }
  0xf9   : > { %v898_v52 = vmul.f32 %v1641_v30, %v897_v43  ;;  %v1038_v13 = vsub.f32 1.0, %v1037_v48  ;;  %vm976_vm6 = vweird.f32 %v2131_v0  ;;  %v983_v63 = vor.u32 1.1754944e-38, %v982_v38 }
  0xfa   : > { %v1094_v53 = vadd.f32 %v1090_v4, %v1086_v47  ;;  %v973_v59 = vsub.f32 1.0, %v972_v50  ;;  %v848_v3 = vadd.f32 %v1996_v22, %v821_v57  ;;  %vm977_vm8 = vweird.f32 %v1647_v46 }
  0xfb   : > { %v899_v60 = vadd.f32 %v1641_v30, %v898_v52  ;;  %1654 = vpow2.f32 %v1514_v55  ;;  %v1651_v12 = vpop.eup %1650  ;;  %vm2195_vm9 = vcmp.eq.f32.partialorder %v980_v54, 8.507059e+37  ;;  %v1025_v22 = vadd.f32 %v2062_v31, %v1024_v62  ;;  %vm978_vm11 = vmor %vm976_vm6, %vm977_vm8 }
  0xfc   : > { %1106 = vst [vmem:[%s2125_s30 + $0x8] sm:$0xff] %v1094_v53  ;;  %v974_v8 = vmul.f32 %v1647_v46, %v973_v59  ;;  %1656 = vtanh.f32 %v1094_v53  ;;  %v1518_v16 = vmul.f32 -1.442695, %v848_v3  ;;  %v1653_v19 = vpop.eup %1652  ;;  %v2199_v20 = vadd.f32 1.0, %v1651_v12 }
  0xfd   : > { %v903_v11 = vsel %vm902_vm7, %v1641_v30, %v899_v60  ;;  %vm1027_vm10 = vweird.f32 %v2062_v31  ;;  %v2205_v21 = vadd.f32 1.0, %v1653_v19  ;;  %vm1026_vm12 = vweird.f32 %v2022_v56 }
  0xfe   : > { %v908_v14 = vsel %vm2169_vm4, %v907_v61, %v903_v11  ;;  %v975_v49 = vadd.f32 %v1647_v46, %v974_v8  ;;  %1658 = vpow2.f32 %v1518_v16  ;;  %v1039_v24 = vmul.f32 %v2161_v36, %v1038_v13  ;;  %vm2214_vm13 = vmor %vm1026_vm12, %vm1027_vm10 }
  0xff   : > { %v1091_v26 = vmul.f32 %v1645_v42, %v908_v14  ;;  %1660 = vrcp.f32 %v2199_v20  ;;  %v1032_v5 = vand.u32 2147483648, %v2022_v56  ;;  %v1030_v27 = vand.u32 2147483647, %v2022_v56 }
 0x100   : > { %v979_v25 = vsel %vm978_vm11, %v1647_v46, %v975_v49  ;;  %1662 = vrcp.f32 %v2205_v21  ;;  %vm1042_vm14 = vweird.f32 %v2161_v36  ;;  %v802_v30 = vadd.f32 %v801_v23, %v1986_v9 }
 0x101   : > { %v984_v6 = vsel %vm2195_vm9, %v983_v63, %v979_v25  ;;  %v1655_v28 = vpop.eup %1654  ;;  %v1029_v32 = vsel %vm2214_vm13, %v2062_v31, %v1025_v22  ;;  %v1040_v33 = vadd.f32 %v2161_v36, %v1039_v24  ;;  %vm1041_vm15 = vweird.f32 %v2090_v45 }
 0x102   : > { %v1087_v29 = vmul.f32 %v2119_v1, %v984_v6  ;;  %v1657_v34 = vpop.eup %1656  ;;  %v2226_v10 = vadd.f32 1.0, %v1655_v28  ;;  %v1045_v56 = vand.u32 2147483647, %v2090_v45  ;;  %v1047_v17 = vand.u32 2147483648, %v2090_v45  ;;  %vm2231_vm0 = vmor %vm1041_vm15, %vm1042_vm14 }
 0x103   : > { %v1033_v37 = vor.u32 1.1754944e-38, %v1032_v5  ;;  %vm1031_vm2 = vcmp.eq.f32.partialorder %v1030_v27, 8.507059e+37  ;;  %v1044_v39 = vsel %vm2231_vm0, %v2161_v36, %v1040_v33  ;;  %v847_v38 = vadd.f32 %v2004_v35, %v802_v30 }
 0x104   : > { %v1095_v1 = vadd.f32 %v1091_v26, %v1087_v29  ;;  %v1659_v31 = vpop.eup %1658  ;;  %1664 = vrcp.f32 %v2226_v10  ;;  %v1048_v42 = vor.u32 1.1754944e-38, %v1047_v17  ;;  %vm1046_vm3 = vcmp.eq.f32.partialorder %v1045_v56, 8.507059e+37  ;;  %v1609_v17 = vld [vmem:[%s2301_s7] ss:$0 sm:$0xff] }
 0x105   : > { %v1661_v7 = vpop.eup %1660  ;;  %v2241_v40 = vadd.f32 1.0, %v1659_v31  ;;  %v1034_v45 = vsel %vm1031_vm2, %v1033_v37, %v1029_v32  ;;  %v919_v41 = vand.u32 2147483647, %v2205_v21  ;;  %v921_v46 = vand.u32 2147483648, %v2205_v21 }
 0x106   : > { %1107 = vst [vmem:[%s2125_s30 + $0x10] sm:$0xff] %v1095_v1  ;;  %v1663_v18 = vpop.eup %1662  ;;  %1666 = vtanh.f32 %v1095_v1  ;;  %v1052_v4 = vmul.f32 %v1661_v7, %v2199_v20  ;;  %v1101_v36 = vmul.f32 %v2185_v58, %v1034_v45  ;;  %v1049_v43 = vsel %vm1046_vm3, %v1048_v42, %v1044_v39 }
 0x107   : > { %v911_v35 = vmul.f32 %v1663_v18, %v2205_v21  ;;  %1668 = vrcp.f32 %v2241_v40  ;;  %v1102_v47 = vmul.f32 %v1657_v34, %v1049_v43  ;;  %v1062_v51 = vand.u32 2147483648, %v2199_v20 }
 0x108   : > { %v1053_v44 = vsub.f32 1.0, %v1052_v4  ;;  %1109 = vst [vmem:[%s2247_s18] sm:$0xff] %v1101_v36  ;;  %1670 = vtanh.f32 %v847_v38  ;;  %vm1057_vm4 = vweird.f32 %v1661_v7  ;;  %v1060_v54 = vand.u32 2147483647, %v2199_v20 }
 0x109   : > { %v912_v48 = vsub.f32 1.0, %v911_v35  ;;  %v1113_v52 = vpack.c.bf16 %v1102_v47, %v1101_v36  ;;  %1110 = vst [vmem:[%s2247_s18 + $0x8] sm:$0xff] %v1102_v47  ;;  %vm915_vm5 = vweird.f32 %v2205_v21  ;;  %vm916_vm6 = vweird.f32 %v1663_v18 }
 0x10a   : > { %v1665_v50 = vpop.eup %1664  ;;  %v1054_v53 = vmul.f32 %v1661_v7, %v1053_v44  ;;  %vm2261_vm7 = vcmp.eq.f32.partialorder %v919_v41, 8.507059e+37  ;;  %v922_v60 = vor.u32 1.1754944e-38, %v921_v46  ;;  %vm1056_vm8 = vweird.f32 %v2199_v20  ;;  %vm917_vm10 = vmor %vm915_vm5, %vm916_vm6 }
 0x10b   : > { %v987_v55 = vmul.f32 %v1665_v50, %v2226_v10  ;;  %v913_v57 = vmul.f32 %v1663_v18, %v912_v48  ;;  %1191 = vmatmul.bf16.vlgmr.msra.gmra.mxu0 %v1113_v52  ;;  %v997_v63 = vand.u32 2147483648, %v2226_v10  ;;  %vm1058_vm9 = vmor %vm1056_vm8, %vm1057_vm4  ;;  %v1063_v8 = vor.u32 1.1754944e-38, %v1062_v51 }
 0x10c   : > { %v1667_v58 = vpop.eup %1666  ;;  %v1055_v61 = vadd.f32 %v1661_v7, %v1054_v53  ;;  %v995_v11 = vand.u32 2147483647, %v2226_v10  ;;  %vm1061_vm11 = vcmp.eq.f32.partialorder %v1060_v54, 8.507059e+37  ;;  %vm992_vm12 = vweird.f32 %v1665_v50 }
 0x10d   : > { %v1669_v62 = vpop.eup %1668  ;;  %v988_v13 = vsub.f32 1.0, %v987_v55  ;;  %v914_v3 = vadd.f32 %v1663_v18, %v913_v57  ;;  %vm991_vm13 = vweird.f32 %v2226_v10  ;;  %v998_v24 = vor.u32 1.1754944e-38, %v997_v63 }
 0x10e   : > { %v1067_v12 = vmul.f32 %v1669_v62, %v2241_v40  ;;  %v1059_v14 = vsel %vm1058_vm9, %v1661_v7, %v1055_v61  ;;  %v1671_v15 = vpop.eup %1670  ;;  %vm993_vm14 = vmor %vm991_vm13, %vm992_vm12  ;;  %vm996_vm15 = vcmp.eq.f32.partialorder %v995_v11, 8.507059e+37  ;;  %vm1072_vm0 = vweird.f32 %v1669_v62 }
 0x10f   : > { %v989_v16 = vmul.f32 %v1665_v50, %v988_v13  ;;  %v918_v19 = vsel %vm917_vm10, %v1663_v18, %v914_v3  ;;  %v1064_v49 = vsel %vm1061_vm11, %v1063_v8, %v1059_v14  ;;  %v1077_v29 = vand.u32 2147483648, %v2241_v40 }
 0x110   : > { %v923_v20 = vsel %vm2261_vm7, %v922_v60, %v918_v19  ;;  %v1068_v22 = vsub.f32 1.0, %v1067_v12  ;;  %v1103_v21 = vmul.f32 %v1667_v58, %v1064_v49  ;;  %vm1071_vm2 = vweird.f32 %v2241_v40 }
 0x111   : > { %v990_v23 = vadd.f32 %v1665_v50, %v989_v16  ;;  %v1092_v26 = vmul.f32 %v1671_v15, %v923_v20  ;;  %v1075_v30 = vand.u32 2147483647, %v2241_v40  ;;  %vm1073_vm3 = vmor %vm1071_vm2, %vm1072_vm0  ;;  %v1078_v33 = vor.u32 1.1754944e-38, %v1077_v29 }
 0x112   : > { %1111 = vst [vmem:[%s2247_s18 + $0x10] sm:$0xff] %v1103_v21  ;;  %v1069_v6 = vmul.f32 %v1669_v62, %v1068_v22 }
 0x113   : > { %v994_v25 = vsel %vm993_vm14, %v1665_v50, %v990_v23  ;;  %vm1076_vm4 = vcmp.eq.f32.partialorder %v1075_v30, 8.507059e+37 }
 0x114   : > { %v999_v5 = vsel %vm996_vm15, %v998_v24, %v994_v25  ;;  %v1070_v28 = vadd.f32 %v1669_v62, %v1069_v6 }
 0x115   : > { %v1088_v0 = vmul.f32 %v2128_v2, %v999_v5 }
 0x116   : > { %v1074_v32 = vsel %vm1073_vm3, %v1669_v62, %v1070_v28 }
 0x117   : > { %v1096_v27 = vadd.f32 %v1092_v26, %v1088_v0  ;;  %v1079_v10 = vsel %vm1076_vm4, %v1078_v33, %v1074_v32 }
 0x119   : > { %1672 = vtanh.f32 %v1096_v27  ;;  %1108 = vst [vmem:[%s2125_s30 + $0x18] sm:$0xff] %v1096_v27 }
 0x11f   : > { %v1673_v34 = vpop.eup %1672 }
 0x120   : > { %v1104_v2 = vmul.f32 %v1673_v34, %v1079_v10 }
 0x122   : > { %1112 = vst [vmem:[%s2247_s18 + $0x18] sm:$0xff] %v1104_v2  ;;  %v1114_v56 = vpack.c.bf16 %v1104_v2, %v1103_v21 }
 0x124   : > { %1196 = vmatmul.bf16.vlgmr.msra.gmra.mxu1 %v1114_v56 }
 0x188   : > { %v1192_v1 = vpop.f32.mrf.mxu0 }
 0x189   : > { %v1193_v37 = vadd.f32 %v1609_v17, %v1192_v1 }
 0x18b   : > { %1202 = vst.msk [vmem:[%s420_s24] sm:$0xff] %vm727_vm1, %v1193_v37 }
 0x190   : > { %v1194_v9 = vpop.f32.mrf.mxu0 }
 0x191   : > { %v1195_v31 = vadd.f32 %v1609_v17, %v1194_v9 }
 0x193   : > { %1203 = vst.msk [vmem:[%s420_s24 + $0x8] sm:$0xff] %vm727_vm1, %v1195_v31 }
 0x1a1   : > { %v1197_v39 = vpop.f32.mrf.mxu1 }
 0x1a2   : > { %v1198_v7 = vadd.f32 %v1609_v17, %v1197_v39 }
 0x1a4   : > { %1204 = vst.msk [vmem:[%s420_s24 + $0x10] sm:$0xff] %vm727_vm1, %v1198_v7 }
 0x1a9   : > { %v1199_v38 = vpop.f32.mrf.mxu1 }
 0x1aa   : > { %v1200_v40 = vadd.f32 %v1609_v17, %v1199_v38 }
 0x1ac   : > { %1205 = vst.msk [vmem:[%s420_s24 + $0x18] sm:$0xff] %vm727_vm1, %v1200_v40 }
 0x1ad PF: > { %s21_s13 = sadd.s32 1, %s1680_s13  }
 0x1ae   : > { %p18_p4 = scmp.ge.s32.totalorder %s21_s13, 4  }
 0x1b0   :  { %20 = sbr.rel (!%p18_p4) target bundleno = 1 (0x1), region = 112 }

</bundles_post_ra>
